<compile_context>
chip_gen: v7x
topology: tpu7x:2x2x1
jax: 0.10.0
libtpu: 0.0.40
codegen_flags: <defaults>
</compile_context>

<pallas_src>
import jax
import jax.numpy as jnp
from jax.experimental import pallas as pl
from jax.experimental.pallas import tpu as pltpu

_LANE = 128
# Resident VMEM per grid step ~ double-buffered (mem-in + xs-in + out) blocks.
# Budget against v5e's 16 MiB scoped-VMEM default (most restrictive); v6e/v7x
# have headroom on top of this.
_VMEM_BLOCK_BUDGET = 8 * 1024 * 1024
_VMEM_LIMIT = 32 * 1024 * 1024   # <= v7x 64 MiB physical; > v5e 16 MiB default

_COMPILER_PARAMS = pltpu.CompilerParams(
    # 1-D feature-tile grid; tiles are independent -> "parallel" lets v7x's two
    # TensorCores each drive their own DMAs whenever the grid has >= 2 steps.
    dimension_semantics=("parallel",),
    vmem_limit_bytes=_VMEM_LIMIT,
)


# --------------------------------------------------------------------------- #
# Kernels
# --------------------------------------------------------------------------- #
def _stm_shift_kernel(mem_ref, xs_ref, out_ref):
    """T folded steps (1 <= T < M): out[:M-T] = mem[T:]; out[M-T:] = xs."""
    M = out_ref.shape[0]
    T = xs_ref.shape[0]
    keep = M - T
    itemsize = jnp.dtype(out_ref.dtype).itemsize
    pack = max(1, 4 // itemsize)          # rows packed per 32-bit sublane
    # Clean XLU sublane rotate (free slot on a DMA-bound kernel) when the
    # layout allows it; otherwise a single static slice copy — both hide
    # entirely under the block DMAs.
    if pack == 1 or (M % (8 * pack) == 0 and T % pack == 0):
        # rolled[i] = mem[(i + T) % M]; one rotate + one aligned full store.
        out_ref[...] = pltpu.roll(mem_ref[...], shift=keep, axis=0)
    else:
        out_ref[pl.ds(0, keep), :] = mem_ref[pl.ds(T, keep), :]
    out_ref[pl.ds(keep, T), :] = xs_ref[...]
    # NOTE: mem[:T] rows are still DMA'd in (then overwritten). For T close to
    # M a manual-DMA path reading only mem[T:] would shave up to ~half the read
    # traffic; T >= M already skips the read entirely (see _stm_replace_kernel).


def _stm_replace_kernel(xs_ref, out_ref):
    """T >= M: the whole buffer is replaced by the last M inputs (no mem read)."""
    out_ref[...] = xs_ref[...]


def _ring_write_kernel(head_ref, x_ref, mem_hbm_ref, out_hbm_ref):
    """Ring-buffer update: DMA the new row into slot `head` of the aliased HBM
    buffer. ~2*dim bytes of HBM traffic per step instead of 2*M*dim."""
    del mem_hbm_ref  # aliased with out_hbm_ref; present only to alias the buffer
    pltpu.sync_copy(x_ref, out_hbm_ref.at[pl.ds(head_ref[0], 1), :])


# --------------------------------------------------------------------------- #
# Tiling / pallas_call builders
# --------------------------------------------------------------------------- #
def _round_up(x, m):
    return (x + m - 1) // m * m


def _feature_tile(resident_rows, D, itemsize):
    """Largest lane-aligned feature tile that divides D while keeping the
    double-buffered resident blocks inside the VMEM budget."""
    assert D % _LANE == 0
    per_lane_bytes = 2 * resident_rows * itemsize          # x2: double buffering
    max_tile = max(_LANE,
                   (_VMEM_BLOCK_BUDGET // max(per_lane_bytes, 1)) // _LANE * _LANE)
    tile = min(D, max_tile)
    while D % tile:
        tile -= _LANE
    # v7x: prefer >= 2 grid steps so both TensorCores shard a bandwidth-bound
    # copy; only worth the per-step overhead when the buffer is large.
    if tile == D and D % (2 * _LANE) == 0 and resident_rows * D * itemsize >= (1 << 20):
        tile = D // 2
    return tile


def _call_shift(buf, xs):
    """1 <= T < M; D already a multiple of 128."""
    M, D = buf.shape
    T = xs.shape[0]
    itemsize = jnp.dtype(buf.dtype).itemsize
    tile = _feature_tile(2 * M + T, D, itemsize)
    grid = (D // tile,)
    return pl.pallas_call(
        _stm_shift_kernel,
        out_shape=jax.ShapeDtypeStruct((M, D), buf.dtype),
        grid=grid,
        in_specs=[pl.BlockSpec((M, tile), lambda j: (0, j)),
                  pl.BlockSpec((T, tile), lambda j: (0, j))],
        out_specs=pl.BlockSpec((M, tile), lambda j: (0, j)),
        # Output reuses the buffer's HBM allocation (in-place update). Safe
        # because input and output index maps are identical per grid step.
        input_output_aliases={0: 0},
        compiler_params=_COMPILER_PARAMS,
    )(buf, xs)


def _call_replace(xs_tail):
    """T >= M: out = xs[-M:]; the old buffer is never read."""
    M, D = xs_tail.shape
    itemsize = jnp.dtype(xs_tail.dtype).itemsize
    tile = _feature_tile(2 * M, D, itemsize)
    grid = (D // tile,)
    return pl.pallas_call(
        _stm_replace_kernel,
        out_shape=jax.ShapeDtypeStruct((M, D), xs_tail.dtype),
        grid=grid,
        in_specs=[pl.BlockSpec((M, tile), lambda j: (0, j))],
        out_specs=pl.BlockSpec((M, tile), lambda j: (0, j)),
        compiler_params=_COMPILER_PARAMS,
    )(xs_tail)


# --------------------------------------------------------------------------- #
# Traced implementations + jitted entry points
# --------------------------------------------------------------------------- #
def _steps_impl(memory_buffer, xs):
    """concat(memory_buffer[T:], xs) for 1 <= T < memory_size."""
    M, D = memory_buffer.shape
    xs = xs.astype(memory_buffer.dtype)
    D_pad = _round_up(D, _LANE)
    if D_pad != D:   # non-lane-aligned dim: zero-pad to keep blocks bounded
        memory_buffer = jnp.pad(memory_buffer, ((0, 0), (0, D_pad - D)))
        xs = jnp.pad(xs, ((0, 0), (0, D_pad - D)))
    out = _call_shift(memory_buffer, xs)
    return out if D_pad == D else out[:, :D]


def _replace_impl(xs_tail):
    M, D = xs_tail.shape
    D_pad = _round_up(D, _LANE)
    if D_pad != D:
        xs_tail = jnp.pad(xs_tail, ((0, 0), (0, D_pad - D)))
    out = _call_replace(xs_tail)
    return out if D_pad == D else out[:, :D]


# Lane-aligned fast path donates (and aliases) the buffer -> true in-place
# update. The padded fallback cannot reuse the caller's buffer, so it is jitted
# without donation (avoids "unused donation" warnings).
_steps_donated = jax.jit(_steps_impl, donate_argnums=(0,))
_steps_plain = jax.jit(_steps_impl)
_replace_jit = jax.jit(_replace_impl)


def short_term_memory_steps(memory_buffer, xs):
    """Fold T sequential forward passes (xs: (T, dim)) into ONE kernel call.

    Equivalent to applying the module forward to xs[0], ..., xs[T-1]; returns
    the updated (memory_size, dim) buffer. Any T >= 0 is allowed.
    """
    M, _D = memory_buffer.shape
    T = xs.shape[0]
    if T == 0:
        return memory_buffer
    if T >= M:
        # Whole buffer replaced: skip the M*D memory read entirely.
        return _replace_jit(xs[-M:].astype(memory_buffer.dtype))
    fn = _steps_donated if _D % _LANE == 0 else _steps_plain
    return fn(memory_buffer, xs)


def short_term_memory_step(memory_buffer, inputs):
    """One forward pass of ShortTermMemory (module-identical semantics).

    For streaming use prefer short_term_memory_steps (or the ring-buffer API);
    a single step is dispatch/DMA-latency bound, not bandwidth bound.
    """
    return short_term_memory_steps(memory_buffer, inputs.reshape(1, -1))


# --------------------------------------------------------------------------- #
# Optional ring-buffer API (cuts per-step HBM traffic from 2*M*dim to ~2*dim).
# Consumers that can index relative to `head` never pay for the full shift.
# --------------------------------------------------------------------------- #
def _ring_step_impl(memory_buffer, head, inputs):
    M, D = memory_buffer.shape
    x = inputs.reshape(1, D).astype(memory_buffer.dtype)
    head = jnp.asarray(head, dtype=jnp.int32).reshape((1,)) % M
    new_buf = pl.pallas_call(
        _ring_write_kernel,
        out_shape=jax.ShapeDtypeStruct((M, D), memory_buffer.dtype),
        in_specs=[
            pl.BlockSpec(memory_space=pltpu.MemorySpace.SMEM),   # head index
            pl.BlockSpec(memory_space=pltpu.MemorySpace.VMEM),   # new row
            pl.BlockSpec(memory_space=pl.ANY),                   # buffer (HBM)
        ],
        out_specs=pl.BlockSpec(memory_space=pl.ANY),
        input_output_aliases={2: 0},   # output IS the (donated) buffer
        compiler_params=pltpu.CompilerParams(vmem_limit_bytes=_VMEM_LIMIT),
    )(head, x, memory_buffer)
    return new_buf, (head[0] + 1) % M


short_term_memory_ring_step = jax.jit(_ring_step_impl, donate_argnums=(0,))


def short_term_memory_ring_view(memory_buffer, head):
    """Materialize the module-ordered view (oldest -> newest) of a ring buffer.

    Only needed when a consumer wants the contiguous ordered buffer; it costs a
    full copy, so fold the roll into the consumer where possible.
    """
    return jnp.roll(memory_buffer, -head, axis=0)


# --------------------------------------------------------------------------- #
# Demo / self-test
# --------------------------------------------------------------------------- #
if __name__ == "__main__":
    key = jax.random.PRNGKey(0)
    k_a, k_b, k_c, k_d = jax.random.split(key, 4)

    # Pure-JAX reference of the module's forward semantics.
    def ref_step(buf, x):
        buf = buf.at[:-1].set(buf[1:])
        buf = buf.at[-1].set(x)
        return buf

    def ref_steps(buf, xs):
        for t in range(xs.shape[0]):
            buf = ref_step(buf, xs[t])
        return buf

    def check(name, got, want):
        got = jax.block_until_ready(got)
        assert got.shape == want.shape and got.dtype == want.dtype, name
        assert jnp.allclose(got.astype(jnp.float32), want.astype(jnp.float32),
                            atol=1e-6), f"{name} mismatch"

    # ---- (a) per-step / batched / ring paths: memory_size=8, dim=128, f32 --
    M, D, T = 8, 128, 3
    xs = jax.random.normal(k_a, (T, D), jnp.float32)
    want = ref_steps(jnp.zeros((M, D), jnp.float32), xs)

    buf = jnp.zeros((M, D), jnp.float32)
    for t in range(T):                       # module-identical streaming use
        buf = short_term_memory_step(buf, xs[t])
    check("per-step", buf, want)

    check("batched",
          short_term_memory_steps(jnp.zeros((M, D), jnp.float32), xs), want)

    rbuf, head = jnp.zeros((M, D), jnp.float32), jnp.int32(0)
    for t in range(T):
        rbuf, head = short_term_memory_ring_step(rbuf, head, xs[t])
    check("ring", short_term_memory_ring_view(rbuf, head), want)

    # ---- (b) M=24 (not a power of two), dim=256, f32: T < M and T > M ------
    M2, D2 = 24, 256
    xs5 = jax.random.normal(k_b, (5, D2), jnp.float32)
    check("T<M f32",
          short_term_memory_steps(jnp.zeros((M2, D2), jnp.float32), xs5),
          ref_steps(jnp.zeros((M2, D2), jnp.float32), xs5))
    xs30 = jax.random.normal(k_c, (30, D2), jnp.float32)
    check("T>M replace",
          short_term_memory_steps(jnp.zeros((M2, D2), jnp.float32), xs30),
          ref_steps(jnp.zeros((M2, D2), jnp.float32), xs30))

    # ---- (c) bf16 (odd shift -> slice fallback) and non-128-multiple dim ---
    M3, D3 = 16, 384
    xs_bf = jax.random.normal(k_d, (3, D3), jnp.float32).astype(jnp.bfloat16)
    check("bf16",
          short_term_memory_steps(jnp.zeros((M3, D3), jnp.bfloat16), xs_bf),
          ref_steps(jnp.zeros((M3, D3), jnp.bfloat16), xs_bf))

    M4, D4 = 8, 96                      # dim % 128 != 0 -> padded fallback
    xs_np = jax.random.normal(k_a, (2, D4), jnp.float32)
    check("padded dim",
          short_term_memory_steps(jnp.zeros((M4, D4), jnp.float32), xs_np),
          ref_steps(jnp.zeros((M4, D4), jnp.float32), xs_np))

    print("KERNEL_OK")
</pallas_src>

<mosaic_0001>
module attributes {stable_mosaic.version = 11 : i64} {
  func.func @_stm_shift_kernel(%arg0: i32, %arg1: memref<8x128xf32, #tpu.memory_space<vmem>>, %arg2: memref<1x128xf32, #tpu.memory_space<vmem>>, %arg3: memref<8x128xf32, #tpu.memory_space<vmem>>) attributes {dimension_semantics = [#tpu.dimension_semantics<parallel>], iteration_bounds = array<i64: 1>, scalar_prefetch = 0 : i64, scratch_operands = 0 : i64, tpu.core_type = #tpu.core_type<tc>, window_params = [{transform_indices = @transform_0, window_bounds = array<i64: 8, 128>}, {transform_indices = @transform_1, window_bounds = array<i64: 1, 128>}, {transform_indices = @transform_2, window_bounds = array<i64: 8, 128>}]} {
    %c0 = arith.constant 0 : index
    %c0_0 = arith.constant 0 : index
    %0 = vector.load %arg1[%c0, %c0_0] : memref<8x128xf32, #tpu.memory_space<vmem>>, vector<8x128xf32>
    %c7_i32 = arith.constant 7 : i32
    %1 = tpu.dynamic_rotate %0 by %c7_i32 dim 0 : vector<8x128xf32>, i32 -> vector<8x128xf32>
    %c0_1 = arith.constant 0 : index
    %c0_2 = arith.constant 0 : index
    %2 = vector.load %arg3[%c0_1, %c0_2] : memref<8x128xf32, #tpu.memory_space<vmem>>, vector<8x128xf32>
    tpu.vector_store %arg3[%c0_1, %c0_2], %1 {strides = array<i32>} : memref<8x128xf32, #tpu.memory_space<vmem>>, vector<8x128xf32>,
    %c0_3 = arith.constant 0 : index
    %c0_4 = arith.constant 0 : index
    %3 = vector.load %arg2[%c0_3, %c0_4] : memref<1x128xf32, #tpu.memory_space<vmem>>, vector<1x128xf32>
    %c7 = arith.constant 7 : index
    %c0_5 = arith.constant 0 : index
    %4 = vector.load %arg3[%c7, %c0_5] : memref<8x128xf32, #tpu.memory_space<vmem>>, vector<1x128xf32>
    tpu.vector_store %arg3[%c7, %c0_5], %3 {strides = array<i32>} : memref<8x128xf32, #tpu.memory_space<vmem>>, vector<1x128xf32>,
    return
  }
  func.func @transform_0(%arg0: i32) -> (i32, i32) {
    %c0_i32 = arith.constant 0 : i32
    %c0_i32_0 = arith.constant 0 : i32
    return %c0_i32, %arg0 : i32, i32
  }
  func.func @transform_1(%arg0: i32) -> (i32, i32) {
    %c0_i32 = arith.constant 0 : i32
    %c0_i32_0 = arith.constant 0 : i32
    return %c0_i32, %arg0 : i32, i32
  }
  func.func @transform_2(%arg0: i32) -> (i32, i32) {
    %c0_i32 = arith.constant 0 : i32
    %c0_i32_0 = arith.constant 0 : i32
    return %c0_i32, %arg0 : i32, i32
  }
}

</mosaic_0001>

<bundles_post_ra>
// kernel: _steps_impl.1
= control target key start
LH: loop header
LB: loop body
LE: loop exit
PB: predicated region body
PF: predicated region fallthrough
CT: control target
= control target key end

     0   :  { %7 = vsyncpa [#allocation3], 0  ;;  %s138_s0 = inlined_call_operand.hbm [shape: f32[8,128], index: 0, kind: input, shape index: {}, may-alias: {0,2}]   ;;  %s139_s1 = inlined_call_operand.vmem [shape: f32[1,128], index: 1, kind: input, shape index: {}]   ;;  %s140_s2 = inlined_call_operand.hbm [shape: f32[8,128], index: 2, kind: output, shape index: {}, may-alias: {0,2}]  }
   0x1   :  { %8 = vsyncpa [#allocation4], 0  ;;  %s94_s9 = smov [#allocation2]   ;;  %s46_s13 = scalar_lea.hbm %s138_s0, 128 }
   0x2   :  { %s15_s10 = sshll.u32 %s94_s9, 4  ;;  %p47_p0 = scmp.ne.s32.totalorder %s138_s0, %s46_s13  ;;  %s16_s10 = int_to_ptr.vmem [resolvable:$true] %s15_s10 }
   0x3   :  { %p50_p1 = scmp.lt.u32.totalorder %s46_s13, %s138_s0 }
   0x5   :  { %p52_p2 = pnand %p50_p1, %p47_p0 }
   0x7   :  { %55 = shalt.err (!%p52_p2)
}
   0x8   :  { %s56_s18 = scalar_lea.vmem %s16_s10, 128  ;;  %p61_p4 = scmp.lt.s32.totalorder %s16_s10, %s16_s10 }
   0x9   :  { %p57_p3 = scmp.ne.s32.totalorder %s16_s10, %s56_s18  ;;  %p62_p5 = scmp.lt.s32.totalorder %s56_s18, %s56_s18 }
   0xb   :  { %p63_p6 = por %p62_p5, %p61_p4 }
   0xd   :  { %p64_p7 = pnand %p63_p6, %p57_p3 }
   0xf   :  { %67 = shalt.err (!%p64_p7)
}
  0x10   :  { %18 = dma.hbm_to_vmem [thread:$0]  %s138_s0, 128, %s16_s10, [#allocation3]  }
  0x11   :  { %90 = dma.done.wait [#allocation3], 128  }
  0x12   :  { %91 = vsyncadd [#allocation3], 4294967168  ;;  %s95_s21 = smov [#allocation5]   ;;  %v24_v0 = vld [vmem:[#allocation2] sm:$0xff] }
  0x13   :  { %s35_s22 = sshll.u32 %s95_s21, 4  ;;  %v25_v1 = vrot.slane %v24_v0, 1  ;;  %v27_v2 = vld [vmem:[%s139_s1] sm:$0x1]  ;;  %s36_s22 = int_to_ptr.vmem [resolvable:$true] %s35_s22 }
  0x14   :  { %s68_s25 = scalar_lea.vmem %s36_s22, 128  ;;  %p73_p9 = scmp.lt.s32.totalorder %s36_s22, %s36_s22 }
  0x15   :  { %26 = vst [vmem:[#allocation5] sm:$0xff] %v25_v1  ;;  %p69_p8 = scmp.ne.s32.totalorder %s36_s22, %s68_s25  ;;  %p74_p10 = scmp.lt.s32.totalorder %s68_s25, %s68_s25 }
  0x16   :  { %28 = vst [vmem:[#allocation5 + $0x7] sm:$0x1] %v27_v2 }
  0x17   :  { %p75_p11 = por %p74_p10, %p73_p9 }
  0x19   :  { %p76_p12 = pnand %p75_p11, %p69_p8 }
  0x1b   :  { %79 = shalt.err (!%p76_p12)
}
  0x1c   :  { %s80_s27 = scalar_lea.hbm %s140_s2, 128 }
  0x1d   :  { %p81_p13 = scmp.ne.s32.totalorder %s140_s2, %s80_s27  ;;  %p84_p0 = scmp.lt.u32.totalorder %s80_s27, %s140_s2 }
  0x1f   :  { %p86_p1 = pnand %p84_p0, %p81_p13 }
  0x21   :  { %89 = shalt.err (!%p86_p1)
}
  0x22   :  { %38 = dma.vmem_to_hbm [thread:$0]  %s36_s22, 128, %s140_s2, [#allocation4]  }
  0x23   :  { %92 = dma.done.wait [#allocation4], 128  }
  0x24   :  { %93 = vsyncadd [#allocation4], 4294967168 }
  0x25   :  { %42 = vsyncpa [#allocation3], 1 }
  0x26   :  { %43 = vsyncpa [#allocation4], 1 }

</bundles_post_ra>
